<compile_context>
chip_gen: v7x
topology: tpu7x:2x2x1
jax: 0.10.0
libtpu: 0.0.40
codegen_flags: <defaults>
</compile_context>

<pallas_src>
import functools

import jax
import jax.numpy as jnp
from jax.experimental import pallas as pl
from jax.experimental.pallas import tpu as pltpu


# ----------------------------- fused Pallas kernel ------------------------------


def _decoder_kernel(ids_ref, emb_ref, h0_ref, c0_ref, wx_ref, wh_ref, b_ref,
                    fcw_ref, fcb_ref, out_ref, h_ref, c_ref,
                    *, n_layers, pad, vpad, seq_len):
    """Full decode: T timesteps x (n_layers LSTM cells + Linear), all in VMEM.

    ids_ref : (T, B, 1)   int32  token ids
    emb_ref : (Vp, P)     bf16   padded embedding table
    h0_ref  : (L, B, P)   f32    initial (encoder) hidden state, padded
    c0_ref  : (L, B, P)   f32    initial (encoder) cell state, padded
    wx_ref  : (L, P, 4P)  bf16   input->gates weights, gate blocks [i,f,g,o] of width P
    wh_ref  : (L, P, 4P)  bf16   hidden->gates weights
    b_ref   : (L, 1, 4P)  f32    fused bias (b_ih + b_hh)
    fcw_ref : (P, Vp)     bf16   fc_out weight
    fcb_ref : (1, Vp)     f32    fc_out bias
    out_ref : (T, B, Vp)  f32    per-timestep logits
    h_ref   : (L, B, P)   f32    running/final hidden state (VMEM-resident)
    c_ref   : (L, B, P)   f32    running/final cell state   (VMEM-resident)
    """
    P = pad
    B = h_ref.shape[1]

    # Initialize running state once (single kernel invocation, no grid).
    h_ref[...] = h0_ref[...]
    c_ref[...] = c0_ref[...]

    def step(t, carry):
        # Fused embedding lookup: one-hot select on the MXU.
        toks = ids_ref[t]                                              # (B, 1) int32
        sel = (toks == jax.lax.broadcasted_iota(jnp.int32, (B, vpad), 1))
        x = jnp.dot(sel.astype(jnp.bfloat16), emb_ref[...],
                    preferred_element_type=jnp.float32)                # (B, P) f32

        for l in range(n_layers):                                      # static unroll (L small)
            h_prev = h_ref[l]                                          # (B, P)
            c_prev = c_ref[l]                                          # (B, P)
            gates = (jnp.dot(x.astype(jnp.bfloat16), wx_ref[l],
                             preferred_element_type=jnp.float32)
                     + jnp.dot(h_prev.astype(jnp.bfloat16), wh_ref[l],
                               preferred_element_type=jnp.float32)
                     + b_ref[l])                                       # (B, 4P) f32
            i_g = jax.nn.sigmoid(gates[:, 0 * P:1 * P])
            f_g = jax.nn.sigmoid(gates[:, 1 * P:2 * P])
            g_g = jnp.tanh(gates[:, 2 * P:3 * P])
            o_g = jax.nn.sigmoid(gates[:, 3 * P:4 * P])
            c_new = f_g * c_prev + i_g * g_g
            h_new = o_g * jnp.tanh(c_new)
            h_ref[l] = h_new
            c_ref[l] = c_new
            x = h_new

        out_ref[t] = (jnp.dot(x.astype(jnp.bfloat16), fcw_ref[...],
                              preferred_element_type=jnp.float32) + fcb_ref[...])
        return carry

    jax.lax.fori_loop(0, seq_len, step, 0, unroll=(seq_len <= 8))


# ------------------------------ parameter handling ------------------------------


def _round_up(x, m):
    return (x + m - 1) // m * m


def init_decoder_params(key, emb_dim, hid_dim, output_dim, n_layers, pad_idx=0):
    """Deterministic torch-layout parameters (w_ih: (4H, in), w_hh: (4H, H), fc_w: (V, H))."""
    keys = iter(jax.random.split(key, 3 + 4 * n_layers))
    emb = 0.1 * jax.random.normal(next(keys), (output_dim, emb_dim), jnp.float32)
    emb = emb.at[pad_idx].set(0.0)                       # padding_idx row is zero
    layers = []
    for l in range(n_layers):
        in_dim = emb_dim if l == 0 else hid_dim
        layers.append(dict(
            w_ih=0.1 * jax.random.normal(next(keys), (4 * hid_dim, in_dim), jnp.float32),
            w_hh=0.1 * jax.random.normal(next(keys), (4 * hid_dim, hid_dim), jnp.float32),
            b_ih=0.1 * jax.random.normal(jax.random.fold_in(key, 100 + l), (4 * hid_dim,), jnp.float32),
            b_hh=0.1 * jax.random.normal(jax.random.fold_in(key, 200 + l), (4 * hid_dim,), jnp.float32),
        ))
    fc_w = 0.1 * jax.random.normal(next(keys), (output_dim, hid_dim), jnp.float32)
    fc_b = 0.1 * jax.random.normal(jax.random.fold_in(key, 300), (output_dim,), jnp.float32)
    return dict(emb=emb, lstm=layers, fc_w=fc_w, fc_b=fc_b)


def prepare_decoder_params(raw, lane=128):
    """Build padded, bf16, kernel-ready parameters (done once, outside the hot path)."""
    emb_dim = raw["emb"].shape[1]
    hid_dim = raw["lstm"][0]["w_hh"].shape[1]
    output_dim = raw["emb"].shape[0]
    n_layers = len(raw["lstm"])
    H = hid_dim
    P = _round_up(max(emb_dim, hid_dim), lane)           # common padded feature width
    Vp = _round_up(output_dim, lane)                     # padded vocab width

    emb_p = jnp.zeros((Vp, P), jnp.float32).at[:output_dim, :emb_dim].set(raw["emb"])

    wx = jnp.zeros((n_layers, P, 4 * P), jnp.float32)
    wh = jnp.zeros((n_layers, P, 4 * P), jnp.float32)
    b = jnp.zeros((n_layers, 1, 4 * P), jnp.float32)
    for l, lp in enumerate(raw["lstm"]):
        in_dim = lp["w_ih"].shape[1]
        bias = lp["b_ih"] + lp["b_hh"]
        for g in range(4):                               # gate order [i, f, g, o]
            wx = wx.at[l, :in_dim, g * P:g * P + H].set(lp["w_ih"][g * H:(g + 1) * H, :].T)
            wh = wh.at[l, :H, g * P:g * P + H].set(lp["w_hh"][g * H:(g + 1) * H, :].T)
            b = b.at[l, 0, g * P:g * P + H].set(bias[g * H:(g + 1) * H])

    fc_w = jnp.zeros((P, Vp), jnp.float32).at[:H, :output_dim].set(raw["fc_w"].T)
    fc_b = jnp.zeros((1, Vp), jnp.float32).at[0, :output_dim].set(raw["fc_b"])

    return dict(emb=emb_p.astype(jnp.bfloat16),
                wx=wx.astype(jnp.bfloat16), wh=wh.astype(jnp.bfloat16), b=b,
                fc_w=fc_w.astype(jnp.bfloat16), fc_b=fc_b,
                emb_dim=emb_dim, hid_dim=hid_dim, output_dim=output_dim,
                n_layers=n_layers, pad=P, vpad=Vp)


# ------------------------------ Decoder forward ------------------------------


def decoder_forward(kparams, x, encoder_hidden_state, encoder_cell_state):
    """Pallas-backed equivalent of Decoder.forward (eval mode, dropout = identity)."""
    x_seq = x if x.ndim == 2 else x[None, :]             # torch: unsqueeze(0) if not 2-D
    T, B = x_seq.shape
    L = kparams["n_layers"]
    H, V = kparams["hid_dim"], kparams["output_dim"]
    P, Vp = kparams["pad"], kparams["vpad"]

    ids = x_seq.astype(jnp.int32)[:, :, None]            # (T, B, 1); gathered in-kernel

    # Zero-pad encoder state; padded lanes of h/c stay zero inside the kernel
    # because padded weight rows/cols and bias are zero (tanh(0)=0).
    h0 = jnp.zeros((L, B, P), jnp.float32).at[:, :, :H].set(encoder_hidden_state)
    c0 = jnp.zeros((L, B, P), jnp.float32).at[:, :, :H].set(encoder_cell_state)

    kernel = functools.partial(_decoder_kernel, n_layers=L, pad=P, vpad=Vp, seq_len=T)
    vmem = pltpu.MemorySpace.VMEM

    out, h_n, c_n = pl.pallas_call(
        kernel,
        out_shape=(
            jax.ShapeDtypeStruct((T, B, Vp), jnp.float32),
            jax.ShapeDtypeStruct((L, B, P), jnp.float32),
            jax.ShapeDtypeStruct((L, B, P), jnp.float32),
        ),
        in_specs=[
            pl.BlockSpec(memory_space=vmem),             # ids
            pl.BlockSpec(memory_space=vmem),             # embedding table
            pl.BlockSpec(memory_space=vmem),             # h0
            pl.BlockSpec(memory_space=vmem),             # c0
            pl.BlockSpec(memory_space=vmem),             # wx
            pl.BlockSpec(memory_space=vmem),             # wh
            pl.BlockSpec(memory_space=vmem),             # bias
            pl.BlockSpec(memory_space=vmem),             # fc weight
            pl.BlockSpec(memory_space=vmem),             # fc bias
        ],
        out_specs=(
            pl.BlockSpec(memory_space=vmem),             # logits (T, B, Vp)
            pl.BlockSpec(memory_space=vmem),             # final h
            pl.BlockSpec(memory_space=vmem),             # final c
        ),
    )(ids, kparams["emb"], h0, c0, kparams["wx"], kparams["wh"], kparams["b"],
      kparams["fc_w"], kparams["fc_b"])

    fc = out[:, :, :V]
    if T == 1:                                           # torch: output.squeeze(0)
        fc = fc[0]
    return fc, h_n[:, :, :H], c_n[:, :, :H]


# ---------------------------- plain-JAX reference ----------------------------


def decoder_forward_ref(raw, x, enc_h, enc_c):
    mm = functools.partial(jnp.dot, precision=jax.lax.Precision.HIGHEST)
    x_seq = x if x.ndim == 2 else x[None, :]
    T, B = x_seq.shape
    H = raw["lstm"][0]["w_hh"].shape[1]
    n_layers = len(raw["lstm"])
    emb = jnp.take(raw["emb"], x_seq, axis=0)
    h = [enc_h[l] for l in range(n_layers)]
    c = [enc_c[l] for l in range(n_layers)]
    outs = []
    for t in range(T):
        xin = emb[t]
        for l in range(n_layers):
            p = raw["lstm"][l]
            gates = mm(xin, p["w_ih"].T) + mm(h[l], p["w_hh"].T) + p["b_ih"] + p["b_hh"]
            i_g = jax.nn.sigmoid(gates[:, 0 * H:1 * H])
            f_g = jax.nn.sigmoid(gates[:, 1 * H:2 * H])
            g_g = jnp.tanh(gates[:, 2 * H:3 * H])
            o_g = jax.nn.sigmoid(gates[:, 3 * H:4 * H])
            c[l] = f_g * c[l] + i_g * g_g
            h[l] = o_g * jnp.tanh(c[l])
            xin = h[l]
        outs.append(xin)
    out = jnp.stack(outs, axis=0)
    fc = mm(out, raw["fc_w"].T) + raw["fc_b"]
    if T == 1:
        fc = fc[0]
    return fc, jnp.stack(h, axis=0), jnp.stack(c, axis=0)


# ----------------------------------- main -----------------------------------

if __name__ == "__main__":
    emb_dim, hid_dim, output_dim, n_layers = 16, 32, 40, 2
    batch = 8

    key = jax.random.PRNGKey(0)
    k_params, k_x, k_h, k_c, k_x2 = jax.random.split(key, 5)

    raw = init_decoder_params(k_params, emb_dim, hid_dim, output_dim, n_layers)
    kparams = prepare_decoder_params(raw)

    x = jax.random.randint(k_x, (batch,), 0, output_dim, dtype=jnp.int32)
    encoder_hidden_state = jax.random.normal(k_h, (n_layers, batch, hid_dim), jnp.float32)
    encoder_cell_state = jax.random.normal(k_c, (n_layers, batch, hid_dim), jnp.float32)

    # Single-step decode ((B,) token input, like x.unsqueeze(0) in PyTorch).
    fc_out, hidden, cell = decoder_forward(kparams, x, encoder_hidden_state, encoder_cell_state)
    jax.block_until_ready((fc_out, hidden, cell))
    assert fc_out.shape == (batch, output_dim)
    assert hidden.shape == (n_layers, batch, hid_dim)
    assert cell.shape == (n_layers, batch, hid_dim)

    fc_r, h_r, c_r = decoder_forward_ref(raw, x, encoder_hidden_state, encoder_cell_state)
    assert jnp.allclose(fc_out, fc_r, atol=2e-2, rtol=2e-2)      # bf16 matmuls, f32 accumulate
    assert jnp.allclose(hidden, h_r, atol=2e-2, rtol=2e-2)
    assert jnp.allclose(cell, c_r, atol=2e-2, rtol=2e-2)

    # Multi-step (T, B) input exercises the in-kernel time loop + VMEM-resident state.
    T = 3
    x2 = jax.random.randint(k_x2, (T, batch), 0, output_dim, dtype=jnp.int32)
    fc2, h2, c2 = decoder_forward(kparams, x2, encoder_hidden_state, encoder_cell_state)
    jax.block_until_ready((fc2, h2, c2))
    fc2_r, h2_r, c2_r = decoder_forward_ref(raw, x2, encoder_hidden_state, encoder_cell_state)
    assert fc2.shape == (T, batch, output_dim)
    assert jnp.allclose(fc2, fc2_r, atol=2e-2, rtol=2e-2)
    assert jnp.allclose(h2, h2_r, atol=2e-2, rtol=2e-2)
    assert jnp.allclose(c2, c2_r, atol=2e-2, rtol=2e-2)

    print("KERNEL_OK")
</pallas_src>

<mosaic_0001>
module attributes {stable_mosaic.version = 11 : i64} {
  func.func @_decoder_kernel(%arg0: memref<1x8x1xi32, #tpu.memory_space<vmem>>, %arg1: memref<128x128xbf16, #tpu.memory_space<vmem>>, %arg2: memref<2x8x128xf32, #tpu.memory_space<vmem>>, %arg3: memref<2x8x128xf32, #tpu.memory_space<vmem>>, %arg4: memref<2x128x512xbf16, #tpu.memory_space<vmem>>, %arg5: memref<2x128x512xbf16, #tpu.memory_space<vmem>>, %arg6: memref<2x1x512xf32, #tpu.memory_space<vmem>>, %arg7: memref<128x128xbf16, #tpu.memory_space<vmem>>, %arg8: memref<1x128xf32, #tpu.memory_space<vmem>>, %arg9: memref<1x8x128xf32, #tpu.memory_space<vmem>>, %arg10: memref<2x8x128xf32, #tpu.memory_space<vmem>>, %arg11: memref<2x8x128xf32, #tpu.memory_space<vmem>>) attributes {dimension_semantics = [], scalar_prefetch = 0 : i64, scratch_operands = 0 : i64, tpu.core_type = #tpu.core_type<tc>} {
    %c0 = arith.constant 0 : index
    %c0_0 = arith.constant 0 : index
    %c0_1 = arith.constant 0 : index
    %0 = vector.load %arg2[%c0, %c0_0, %c0_1] : memref<2x8x128xf32, #tpu.memory_space<vmem>>, vector<2x8x128xf32>
    %c0_2 = arith.constant 0 : index
    %c0_3 = arith.constant 0 : index
    %c0_4 = arith.constant 0 : index
    %1 = vector.load %arg10[%c0_2, %c0_3, %c0_4] : memref<2x8x128xf32, #tpu.memory_space<vmem>>, vector<2x8x128xf32>
    tpu.vector_store %arg10[%c0_2, %c0_3, %c0_4], %0 {strides = array<i32>} : memref<2x8x128xf32, #tpu.memory_space<vmem>>, vector<2x8x128xf32>,
    %c0_5 = arith.constant 0 : index
    %c0_6 = arith.constant 0 : index
    %c0_7 = arith.constant 0 : index
    %2 = vector.load %arg3[%c0_5, %c0_6, %c0_7] : memref<2x8x128xf32, #tpu.memory_space<vmem>>, vector<2x8x128xf32>
    %c0_8 = arith.constant 0 : index
    %c0_9 = arith.constant 0 : index
    %c0_10 = arith.constant 0 : index
    %3 = vector.load %arg11[%c0_8, %c0_9, %c0_10] : memref<2x8x128xf32, #tpu.memory_space<vmem>>, vector<2x8x128xf32>
    tpu.vector_store %arg11[%c0_8, %c0_9, %c0_10], %2 {strides = array<i32>} : memref<2x8x128xf32, #tpu.memory_space<vmem>>, vector<2x8x128xf32>,
    %c0_i32 = arith.constant 0 : i32
    %4 = arith.index_cast %c0_i32 : i32 to index
    %c0_11 = arith.constant 0 : index
    %c0_12 = arith.constant 0 : index
    %5 = vector.load %arg0[%4, %c0_11, %c0_12] : memref<1x8x1xi32, #tpu.memory_space<vmem>>, vector<1x8x1xi32>
    %6 = vector.shape_cast %5 : vector<1x8x1xi32> to vector<8x1xi32>
    %7 = tpu.iota {dimensions = array<i32: 1>} : vector<8x128xi32>
    %8 = vector.broadcast %6 : vector<8x1xi32> to vector<8x128xi32>
    %9 = arith.cmpi eq, %8, %7 : vector<8x128xi32>
    %10 = arith.extui %9 : vector<8x128xi1> to vector<8x128xi32>
    %11 = arith.sitofp %10 : vector<8x128xi32> to vector<8x128xf32>
    %12 = arith.truncf %11 : vector<8x128xf32> to vector<8x128xbf16>
    %c0_13 = arith.constant 0 : index
    %c0_14 = arith.constant 0 : index
    %13 = vector.load %arg1[%c0_13, %c0_14] : memref<128x128xbf16, #tpu.memory_space<vmem>>, vector<128x128xbf16>
    %cst = arith.constant dense<0.000000e+00> : vector<8x128xf32>
    %14 = tpu.matmul %12, %13, %cst {dimension_numbers = #tpu.dot_dimension_numbers<[1], [0], [0], [1], [0, 0, 1, 1], [], []>} : vector<8x128xbf16>, vector<128x128xbf16>, vector<8x128xf32> -> vector<8x128xf32>
    %c0_15 = arith.constant 0 : index
    %c0_16 = arith.constant 0 : index
    %c0_17 = arith.constant 0 : index
    %15 = vector.load %arg10[%c0_15, %c0_16, %c0_17] : memref<2x8x128xf32, #tpu.memory_space<vmem>>, vector<1x8x128xf32>
    %16 = vector.shape_cast %15 : vector<1x8x128xf32> to vector<8x128xf32>
    %c0_18 = arith.constant 0 : index
    %c0_19 = arith.constant 0 : index
    %c0_20 = arith.constant 0 : index
    %17 = vector.load %arg11[%c0_18, %c0_19, %c0_20] : memref<2x8x128xf32, #tpu.memory_space<vmem>>, vector<1x8x128xf32>
    %18 = vector.shape_cast %17 : vector<1x8x128xf32> to vector<8x128xf32>
    %19 = arith.truncf %14 : vector<8x128xf32> to vector<8x128xbf16>
    %c0_21 = arith.constant 0 : index
    %c0_22 = arith.constant 0 : index
    %c0_23 = arith.constant 0 : index
    %20 = vector.load %arg4[%c0_21, %c0_22, %c0_23] : memref<2x128x512xbf16, #tpu.memory_space<vmem>>, vector<1x128x512xbf16>
    %21 = vector.shape_cast %20 : vector<1x128x512xbf16> to vector<128x512xbf16>
    %cst_24 = arith.constant dense<0.000000e+00> : vector<8x512xf32>
    %22 = tpu.matmul %19, %21, %cst_24 {dimension_numbers = #tpu.dot_dimension_numbers<[1], [0], [0], [1], [0, 0, 1, 1], [], []>} : vector<8x128xbf16>, vector<128x512xbf16>, vector<8x512xf32> -> vector<8x512xf32>
    %23 = arith.truncf %16 : vector<8x128xf32> to vector<8x128xbf16>
    %c0_25 = arith.constant 0 : index
    %c0_26 = arith.constant 0 : index
    %c0_27 = arith.constant 0 : index
    %24 = vector.load %arg5[%c0_25, %c0_26, %c0_27] : memref<2x128x512xbf16, #tpu.memory_space<vmem>>, vector<1x128x512xbf16>
    %25 = vector.shape_cast %24 : vector<1x128x512xbf16> to vector<128x512xbf16>
    %cst_28 = arith.constant dense<0.000000e+00> : vector<8x512xf32>
    %26 = tpu.matmul %23, %25, %cst_28 {dimension_numbers = #tpu.dot_dimension_numbers<[1], [0], [0], [1], [0, 0, 1, 1], [], []>} : vector<8x128xbf16>, vector<128x512xbf16>, vector<8x512xf32> -> vector<8x512xf32>
    %27 = arith.addf %22, %26 : vector<8x512xf32>
    %c0_29 = arith.constant 0 : index
    %c0_30 = arith.constant 0 : index
    %c0_31 = arith.constant 0 : index
    %28 = vector.load %arg6[%c0_29, %c0_30, %c0_31] : memref<2x1x512xf32, #tpu.memory_space<vmem>>, vector<1x1x512xf32>
    %29 = vector.shape_cast %28 : vector<1x1x512xf32> to vector<1x512xf32>
    %30 = vector.broadcast %29 : vector<1x512xf32> to vector<8x512xf32>
    %31 = arith.addf %27, %30 : vector<8x512xf32>
    %32 = vector.extract_strided_slice %31 {offsets = [0, 0], sizes = [8, 128], strides = [1, 1]} : vector<8x512xf32> to vector<8x128xf32>
    %33 = arith.negf %32 : vector<8x128xf32>
    %34 = math.exp %33 : vector<8x128xf32>
    %cst_32 = arith.constant 1.000000e+00 : f32
    %35 = vector.broadcast %cst_32 : f32 to vector<8x128xf32>
    %36 = arith.addf %35, %34 : vector<8x128xf32>
    %37 = arith.divf %35, %36 : vector<8x128xf32>
    %38 = vector.extract_strided_slice %31 {offsets = [0, 128], sizes = [8, 128], strides = [1, 1]} : vector<8x512xf32> to vector<8x128xf32>
    %39 = arith.negf %38 : vector<8x128xf32>
    %40 = math.exp %39 : vector<8x128xf32>
    %cst_33 = arith.constant 1.000000e+00 : f32
    %41 = vector.broadcast %cst_33 : f32 to vector<8x128xf32>
    %42 = arith.addf %41, %40 : vector<8x128xf32>
    %43 = arith.divf %41, %42 : vector<8x128xf32>
    %44 = vector.extract_strided_slice %31 {offsets = [0, 256], sizes = [8, 128], strides = [1, 1]} : vector<8x512xf32> to vector<8x128xf32>
    %45 = math.tanh %44 : vector<8x128xf32>
    %46 = vector.extract_strided_slice %31 {offsets = [0, 384], sizes = [8, 128], strides = [1, 1]} : vector<8x512xf32> to vector<8x128xf32>
    %47 = arith.negf %46 : vector<8x128xf32>
    %48 = math.exp %47 : vector<8x128xf32>
    %cst_34 = arith.constant 1.000000e+00 : f32
    %49 = vector.broadcast %cst_34 : f32 to vector<8x128xf32>
    %50 = arith.addf %49, %48 : vector<8x128xf32>
    %51 = arith.divf %49, %50 : vector<8x128xf32>
    %52 = arith.mulf %43, %18 : vector<8x128xf32>
    %53 = arith.mulf %37, %45 : vector<8x128xf32>
    %54 = arith.addf %52, %53 : vector<8x128xf32>
    %55 = math.tanh %54 : vector<8x128xf32>
    %56 = arith.mulf %51, %55 : vector<8x128xf32>
    %c0_35 = arith.constant 0 : index
    %c0_36 = arith.constant 0 : index
    %c0_37 = arith.constant 0 : index
    %57 = vector.load %arg10[%c0_35, %c0_36, %c0_37] : memref<2x8x128xf32, #tpu.memory_space<vmem>>, vector<1x8x128xf32>
    %58 = vector.shape_cast %57 : vector<1x8x128xf32> to vector<8x128xf32>
    %59 = vector.shape_cast %56 : vector<8x128xf32> to vector<1x8x128xf32>
    tpu.vector_store %arg10[%c0_35, %c0_36, %c0_37], %59 {strides = array<i32>} : memref<2x8x128xf32, #tpu.memory_space<vmem>>, vector<1x8x128xf32>,
    %c0_38 = arith.constant 0 : index
    %c0_39 = arith.constant 0 : index
    %c0_40 = arith.constant 0 : index
    %60 = vector.load %arg11[%c0_38, %c0_39, %c0_40] : memref<2x8x128xf32, #tpu.memory_space<vmem>>, vector<1x8x128xf32>
    %61 = vector.shape_cast %60 : vector<1x8x128xf32> to vector<8x128xf32>
    %62 = vector.shape_cast %54 : vector<8x128xf32> to vector<1x8x128xf32>
    tpu.vector_store %arg11[%c0_38, %c0_39, %c0_40], %62 {strides = array<i32>} : memref<2x8x128xf32, #tpu.memory_space<vmem>>, vector<1x8x128xf32>,
    %c1 = arith.constant 1 : index
    %c0_41 = arith.constant 0 : index
    %c0_42 = arith.constant 0 : index
    %63 = vector.load %arg10[%c1, %c0_41, %c0_42] : memref<2x8x128xf32, #tpu.memory_space<vmem>>, vector<1x8x128xf32>
    %64 = vector.shape_cast %63 : vector<1x8x128xf32> to vector<8x128xf32>
    %c1_43 = arith.constant 1 : index
    %c0_44 = arith.constant 0 : index
    %c0_45 = arith.constant 0 : index
    %65 = vector.load %arg11[%c1_43, %c0_44, %c0_45] : memref<2x8x128xf32, #tpu.memory_space<vmem>>, vector<1x8x128xf32>
    %66 = vector.shape_cast %65 : vector<1x8x128xf32> to vector<8x128xf32>
    %67 = arith.truncf %56 : vector<8x128xf32> to vector<8x128xbf16>
    %c1_46 = arith.constant 1 : index
    %c0_47 = arith.constant 0 : index
    %c0_48 = arith.constant 0 : index
    %68 = vector.load %arg4[%c1_46, %c0_47, %c0_48] : memref<2x128x512xbf16, #tpu.memory_space<vmem>>, vector<1x128x512xbf16>
    %69 = vector.shape_cast %68 : vector<1x128x512xbf16> to vector<128x512xbf16>
    %cst_49 = arith.constant dense<0.000000e+00> : vector<8x512xf32>
    %70 = tpu.matmul %67, %69, %cst_49 {dimension_numbers = #tpu.dot_dimension_numbers<[1], [0], [0], [1], [0, 0, 1, 1], [], []>} : vector<8x128xbf16>, vector<128x512xbf16>, vector<8x512xf32> -> vector<8x512xf32>
    %71 = arith.truncf %64 : vector<8x128xf32> to vector<8x128xbf16>
    %c1_50 = arith.constant 1 : index
    %c0_51 = arith.constant 0 : index
    %c0_52 = arith.constant 0 : index
    %72 = vector.load %arg5[%c1_50, %c0_51, %c0_52] : memref<2x128x512xbf16, #tpu.memory_space<vmem>>, vector<1x128x512xbf16>
    %73 = vector.shape_cast %72 : vector<1x128x512xbf16> to vector<128x512xbf16>
    %cst_53 = arith.constant dense<0.000000e+00> : vector<8x512xf32>
    %74 = tpu.matmul %71, %73, %cst_53 {dimension_numbers = #tpu.dot_dimension_numbers<[1], [0], [0], [1], [0, 0, 1, 1], [], []>} : vector<8x128xbf16>, vector<128x512xbf16>, vector<8x512xf32> -> vector<8x512xf32>
    %75 = arith.addf %70, %74 : vector<8x512xf32>
    %c1_54 = arith.constant 1 : index
    %c0_55 = arith.constant 0 : index
    %c0_56 = arith.constant 0 : index
    %76 = vector.load %arg6[%c1_54, %c0_55, %c0_56] : memref<2x1x512xf32, #tpu.memory_space<vmem>>, vector<1x1x512xf32>
    %77 = vector.shape_cast %76 : vector<1x1x512xf32> to vector<1x512xf32>
    %78 = vector.broadcast %77 : vector<1x512xf32> to vector<8x512xf32>
    %79 = arith.addf %75, %78 : vector<8x512xf32>
    %80 = vector.extract_strided_slice %79 {offsets = [0, 0], sizes = [8, 128], strides = [1, 1]} : vector<8x512xf32> to vector<8x128xf32>
    %81 = arith.negf %80 : vector<8x128xf32>
    %82 = math.exp %81 : vector<8x128xf32>
    %cst_57 = arith.constant 1.000000e+00 : f32
    %83 = vector.broadcast %cst_57 : f32 to vector<8x128xf32>
    %84 = arith.addf %83, %82 : vector<8x128xf32>
    %85 = arith.divf %83, %84 : vector<8x128xf32>
    %86 = vector.extract_strided_slice %79 {offsets = [0, 128], sizes = [8, 128], strides = [1, 1]} : vector<8x512xf32> to vector<8x128xf32>
    %87 = arith.negf %86 : vector<8x128xf32>
    %88 = math.exp %87 : vector<8x128xf32>
    %cst_58 = arith.constant 1.000000e+00 : f32
    %89 = vector.broadcast %cst_58 : f32 to vector<8x128xf32>
    %90 = arith.addf %89, %88 : vector<8x128xf32>
    %91 = arith.divf %89, %90 : vector<8x128xf32>
    %92 = vector.extract_strided_slice %79 {offsets = [0, 256], sizes = [8, 128], strides = [1, 1]} : vector<8x512xf32> to vector<8x128xf32>
    %93 = math.tanh %92 : vector<8x128xf32>
    %94 = vector.extract_strided_slice %79 {offsets = [0, 384], sizes = [8, 128], strides = [1, 1]} : vector<8x512xf32> to vector<8x128xf32>
    %95 = arith.negf %94 : vector<8x128xf32>
    %96 = math.exp %95 : vector<8x128xf32>
    %cst_59 = arith.constant 1.000000e+00 : f32
    %97 = vector.broadcast %cst_59 : f32 to vector<8x128xf32>
    %98 = arith.addf %97, %96 : vector<8x128xf32>
    %99 = arith.divf %97, %98 : vector<8x128xf32>
    %100 = arith.mulf %91, %66 : vector<8x128xf32>
    %101 = arith.mulf %85, %93 : vector<8x128xf32>
    %102 = arith.addf %100, %101 : vector<8x128xf32>
    %103 = math.tanh %102 : vector<8x128xf32>
    %104 = arith.mulf %99, %103 : vector<8x128xf32>
    %c1_60 = arith.constant 1 : index
    %c0_61 = arith.constant 0 : index
    %c0_62 = arith.constant 0 : index
    %105 = vector.load %arg10[%c1_60, %c0_61, %c0_62] : memref<2x8x128xf32, #tpu.memory_space<vmem>>, vector<1x8x128xf32>
    %106 = vector.shape_cast %105 : vector<1x8x128xf32> to vector<8x128xf32>
    %107 = vector.shape_cast %104 : vector<8x128xf32> to vector<1x8x128xf32>
    tpu.vector_store %arg10[%c1_60, %c0_61, %c0_62], %107 {strides = array<i32>} : memref<2x8x128xf32, #tpu.memory_space<vmem>>, vector<1x8x128xf32>,
    %c1_63 = arith.constant 1 : index
    %c0_64 = arith.constant 0 : index
    %c0_65 = arith.constant 0 : index
    %108 = vector.load %arg11[%c1_63, %c0_64, %c0_65] : memref<2x8x128xf32, #tpu.memory_space<vmem>>, vector<1x8x128xf32>
    %109 = vector.shape_cast %108 : vector<1x8x128xf32> to vector<8x128xf32>
    %110 = vector.shape_cast %102 : vector<8x128xf32> to vector<1x8x128xf32>
    tpu.vector_store %arg11[%c1_63, %c0_64, %c0_65], %110 {strides = array<i32>} : memref<2x8x128xf32, #tpu.memory_space<vmem>>, vector<1x8x128xf32>,
    %111 = arith.truncf %104 : vector<8x128xf32> to vector<8x128xbf16>
    %c0_66 = arith.constant 0 : index
    %c0_67 = arith.constant 0 : index
    %112 = vector.load %arg7[%c0_66, %c0_67] : memref<128x128xbf16, #tpu.memory_space<vmem>>, vector<128x128xbf16>
    %cst_68 = arith.constant dense<0.000000e+00> : vector<8x128xf32>
    %113 = tpu.matmul %111, %112, %cst_68 {dimension_numbers = #tpu.dot_dimension_numbers<[1], [0], [0], [1], [0, 0, 1, 1], [], []>} : vector<8x128xbf16>, vector<128x128xbf16>, vector<8x128xf32> -> vector<8x128xf32>
    %c0_69 = arith.constant 0 : index
    %c0_70 = arith.constant 0 : index
    %114 = vector.load %arg8[%c0_69, %c0_70] : memref<1x128xf32, #tpu.memory_space<vmem>>, vector<1x128xf32>
    %115 = vector.broadcast %114 : vector<1x128xf32> to vector<8x128xf32>
    %116 = arith.addf %113, %115 : vector<8x128xf32>
    %117 = arith.index_cast %c0_i32 : i32 to index
    %c0_71 = arith.constant 0 : index
    %c0_72 = arith.constant 0 : index
    %118 = vector.load %arg9[%117, %c0_71, %c0_72] : memref<1x8x128xf32, #tpu.memory_space<vmem>>, vector<1x8x128xf32>
    %119 = vector.shape_cast %118 : vector<1x8x128xf32> to vector<8x128xf32>
    %120 = vector.shape_cast %116 : vector<8x128xf32> to vector<1x8x128xf32>
    tpu.vector_store %arg9[%117, %c0_71, %c0_72], %120 {strides = array<i32>} : memref<1x8x128xf32, #tpu.memory_space<vmem>>, vector<1x8x128xf32>,
    %c1_i32 = arith.constant 1 : i32
    return
  }
}

</mosaic_0001>

<bundles_post_ra>
// kernel: tpu_custom_call.1
= control target key start
LH: loop header
LB: loop body
LE: loop exit
PB: predicated region body
PF: predicated region fallthrough
CT: control target
= control target key end

     0   :  { %17 = vsyncpa [#allocation3], 0  ;;  %s2542_s0 = inlined_call_operand.vmem [shape: s32[1,8,1], index: 0, kind: input, shape index: {}]   ;;  %s2543_s1 = inlined_call_operand.hbm [shape: bf16[128,128], index: 1, kind: input, shape index: {}]   ;;  %s2544_s2 = inlined_call_operand.vmem [shape: f32[2,8,128], index: 2, kind: input, shape index: {}]   ;;  %s2545_s3 = inlined_call_operand.hbm [shape: f32[2,8,128], index: 3, kind: input, shape index: {}]   ;;  %s2546_s4 = inlined_call_operand.hbm [shape: bf16[2,128,512], index: 4, kind: input, shape index: {}]   ;;  %s2547_s5 = inlined_call_operand.hbm [shape: bf16[2,128,512], index: 5, kind: input, shape index: {}]   ;;  %s2548_s6 = inlined_call_operand.vmem [shape: f32[2,1,512], index: 6, kind: input, shape index: {}]   ;;  %s2549_s7 = inlined_call_operand.hbm [shape: bf16[128,128], index: 7, kind: input, shape index: {}]   ;;  %s2550_s8 = inlined_call_operand.vmem [shape: f32[1,128], index: 8, kind: input, shape index: {}]   ;;  %s2551_s9 = inlined_call_operand.hbm [shape: f32[1,8,128], index: 9, kind: output, shape index: {0}]   ;;  %s2552_s10 = inlined_call_operand.hbm [shape: f32[2,8,128], index: 10, kind: output, shape index: {1}]   ;;  %s2553_s11 = inlined_call_operand.hbm [shape: f32[2,8,128], index: 11, kind: output, shape index: {2}]  }
   0x1   :  { %18 = vsyncpa [#allocation6], 0 }
   0x2   :  { %19 = vsyncpa [#allocation9], 0 }
   0x3   :  { %20 = vsyncpa [#allocation4], 0 }
   0x4   :  { %21 = vsyncpa [#allocation13], 0  ;;  %s2260_s17 = smov [#allocation5]   ;;  %s2074_s21 = scalar_lea.hbm %s2545_s3, 256 }
   0x5   :  { %s43_s18 = sshll.u32 %s2260_s17, 4  ;;  %p2075_p0 = scmp.ne.s32.totalorder %s2545_s3, %s2074_s21  ;;  %s44_s18 = int_to_ptr.vmem [resolvable:$true] %s43_s18 }
   0x6   :  { %p2078_p1 = scmp.lt.u32.totalorder %s2074_s21, %s2545_s3 }
   0x8   :  { %p2080_p2 = pnand %p2078_p1, %p2075_p0 }
   0xa   :  { %2083 = shalt.err (!%p2080_p2)
}
   0xb   :  { %s2084_s26 = scalar_lea.vmem %s44_s18, 256  ;;  %p2089_p4 = scmp.lt.s32.totalorder %s44_s18, %s44_s18 }
   0xc   :  { %p2085_p3 = scmp.ne.s32.totalorder %s44_s18, %s2084_s26  ;;  %p2090_p5 = scmp.lt.s32.totalorder %s2084_s26, %s2084_s26 }
   0xe   :  { %p2091_p6 = por %p2090_p5, %p2089_p4 }
  0x10   :  { %p2092_p7 = pnand %p2091_p6, %p2085_p3 }
  0x12   :  { %2095 = shalt.err (!%p2092_p7)
}
  0x13   :  { %s2261_s27 = smov 128   ;;  %s2262_s28 = smov 8  }
  0x14   :  { %49 = dma.hbm_to_vmem [thread:$0]  %s2545_s3, 256, %s44_s18, [#allocation6], %s2261_s27, %s2261_s27, %s2262_s28  }
  0x15   :  { %s2263_s12 = smov [#allocation8]   ;;  %s2264_s14 = smov [#allocation2]  }
  0x16   :  { %s67_s13 = sshll.u32 %s2263_s12, 4  ;;  %s29_s15 = sshll.u32 %s2264_s14, 4  ;;  %s68_s13 = int_to_ptr.vmem [resolvable:$true] %s67_s13  ;;  %s30_s15 = int_to_ptr.vmem [resolvable:$true] %s29_s15 }
  0x17   :  { %s2096_s19 = scalar_lea.hbm %s2547_s5, 8192 }
  0x18   :  { %p2097_p8 = scmp.ne.s32.totalorder %s2547_s5, %s2096_s19  ;;  %p2100_p9 = scmp.lt.u32.totalorder %s2096_s19, %s2547_s5 }
  0x1a   :  { %p2102_p10 = pnand %p2100_p9, %p2097_p8 }
  0x1c   :  { %2105 = shalt.err (!%p2102_p10)
}
  0x1d   :  { %s2106_s3 = scalar_lea.vmem %s68_s13, 8192  ;;  %p2111_p12 = scmp.lt.s32.totalorder %s68_s13, %s68_s13 }
  0x1e   :  { %p2107_p11 = scmp.ne.s32.totalorder %s68_s13, %s2106_s3  ;;  %p2112_p13 = scmp.lt.s32.totalorder %s2106_s3, %s2106_s3 }
  0x20   :  { %p2113_p0 = por %p2112_p13, %p2111_p12 }
  0x22   :  { %p2114_p1 = pnand %p2113_p0, %p2107_p11 }
  0x24   :  { %2117 = shalt.err (!%p2114_p1)
}
  0x25   :  { %s2265_s18 = smov 256   ;;  %s2266_s24 = smov 16  }
  0x26   :  { %73 = dma.hbm_to_vmem [thread:$0]  %s2547_s5, 8192, %s68_s13, [#allocation9], %s2265_s18, %s2265_s18, %s2266_s24  }
  0x27   :  { %s2118_s12 = scalar_lea.hbm %s2543_s1, 1024 }
  0x28   :  { %p2119_p2 = scmp.ne.s32.totalorder %s2543_s1, %s2118_s12  ;;  %p2122_p3 = scmp.lt.u32.totalorder %s2118_s12, %s2543_s1 }
  0x2a   :  { %p2124_p4 = pnand %p2122_p3, %p2119_p2 }
  0x2c   :  { %2127 = shalt.err (!%p2124_p4)
}
  0x2d   :  { %s2128_s20 = scalar_lea.vmem %s30_s15, 1024  ;;  %p2133_p6 = scmp.lt.s32.totalorder %s30_s15, %s30_s15 }
  0x2e   :  { %p2129_p5 = scmp.ne.s32.totalorder %s30_s15, %s2128_s20  ;;  %p2134_p7 = scmp.lt.s32.totalorder %s2128_s20, %s2128_s20 }
  0x30   :  { %p2135_p8 = por %p2134_p7, %p2133_p6 }
  0x32   :  { %p2136_p9 = pnand %p2135_p8, %p2129_p5 }
  0x34   :  { %2139 = shalt.err (!%p2136_p9)
}
  0x35   :  { %s2267_s5 = smov 64   ;;  %s2268_s13 = smov 4  }
  0x36   :  { %35 = dma.hbm_to_vmem [thread:$0]  %s2543_s1, 1024, %s30_s15, [#allocation3], %s2267_s5, %s2267_s5, %s2268_s13  }
  0x37   :  { %s2269_s23 = smov [#allocation7]   ;;  %s2270_s25 = smov [#allocation10]  }
  0x38   :  { %s55_s3 = sshll.u32 %s2269_s23, 4  ;;  %s81_s26 = sshll.u32 %s2270_s25, 4  ;;  %s56_s3 = int_to_ptr.vmem [resolvable:$true] %s55_s3  ;;  %s82_s26 = int_to_ptr.vmem [resolvable:$true] %s81_s26 }
  0x39   :  { %s2140_s12 = scalar_lea.hbm %s2546_s4, 8192 }
  0x3a   :  { %p2141_p10 = scmp.ne.s32.totalorder %s2546_s4, %s2140_s12  ;;  %p2144_p11 = scmp.lt.u32.totalorder %s2140_s12, %s2546_s4 }
  0x3c   :  { %p2146_p12 = pnand %p2144_p11, %p2141_p10 }
  0x3e   :  { %2149 = shalt.err (!%p2146_p12)
}
  0x3f   :  { %s2150_s1 = scalar_lea.vmem %s56_s3, 8192  ;;  %p2155_p0 = scmp.lt.s32.totalorder %s56_s3, %s56_s3 }
  0x40   :  { %p2151_p13 = scmp.ne.s32.totalorder %s56_s3, %s2150_s1  ;;  %p2156_p1 = scmp.lt.s32.totalorder %s2150_s1, %s2150_s1 }
  0x42   :  { %p2157_p2 = por %p2156_p1, %p2155_p0 }
  0x44   :  { %p2158_p3 = pnand %p2157_p2, %p2151_p13 }
  0x46   :  { %2161 = shalt.err (!%p2158_p3)
}
  0x47   :  { %61 = dma.hbm_to_vmem [thread:$0]  %s2546_s4, 8192, %s56_s3, [#allocation6], %s2265_s18, %s2265_s18, %s2266_s24  }
  0x48   :  { %s2162_s23 = scalar_lea.hbm %s2549_s7, 1024 }
  0x49   :  { %p2163_p4 = scmp.ne.s32.totalorder %s2549_s7, %s2162_s23  ;;  %p2166_p5 = scmp.lt.u32.totalorder %s2162_s23, %s2549_s7 }
  0x4b   :  { %p2168_p6 = pnand %p2166_p5, %p2163_p4 }
  0x4d   :  { %2171 = shalt.err (!%p2168_p6)
}
  0x4e   :  { %s2172_s14 = scalar_lea.vmem %s82_s26, 1024  ;;  %p2177_p8 = scmp.lt.s32.totalorder %s82_s26, %s82_s26 }
  0x4f   :  { %p2173_p7 = scmp.ne.s32.totalorder %s82_s26, %s2172_s14  ;;  %p2178_p9 = scmp.lt.s32.totalorder %s2172_s14, %s2172_s14 }
  0x51   :  { %p2179_p10 = por %p2178_p9, %p2177_p8 }
  0x53   :  { %p2180_p11 = pnand %p2179_p10, %p2173_p7 }
  0x55   :  { %2183 = shalt.err (!%p2180_p11)
}
  0x56   :  { %87 = dma.hbm_to_vmem [thread:$0]  %s2549_s7, 1024, %s82_s26, [#allocation9], %s2267_s5, %s2267_s5, %s2268_s13  }
  0x57   :  { %2250 = dma.done.wait [#allocation3], 1024  }
  0x58   :  { %2251 = vsyncadd [#allocation3], 4294966272 }
  0x59   :  { %2252 = dma.done.wait [#allocation6], 8448  }
  0x5a   :  { %2253 = vsyncadd [#allocation6], 4294958848 }
  0x5b   :  { %2254 = dma.done.wait [#allocation9], 9216  }
  0x5c   :  { %2255 = vsyncadd [#allocation9], 4294958080  ;;  %v2271_v0 = vmov 0   ;;  %v2272_v1 = vmov 0.0   ;;  %v114_v2 = vld [vmem:[%s2542_s0] sm:$0xff]  ;;  %vm2273_vm0 = vmmov 0   ;;  %v115_v46 = vlaneseq }
  0x5d   :  { %1833 = vset.pattern.permute.xlu0 %v2271_v0  ;;  %1775 = vmatprep.subr.bf16.mxu0 %v2272_v1  ;;  %v1834_v3 = vld [vmem:[#allocation2] sm:$0xff]   ;;  %v1835_v4 = vld [vmem:[#allocation2 + $0x8] sm:$0xff]   ;;  %v1836_v5 = vld [vmem:[#allocation2 + $0x10] sm:$0xff]   ;;  %v2274_v51 = vmov 1.0|1.0  }
  0x5e   :  { %488 = vmatprep.mubr.bf16.mxu1 %v2271_v0  ;;  %118 = vperm.xlu0 %1833, %v114_v2   ;;  %v1842_v6 = vld [vmem:[#allocation8 + $0x4] ss:$16 sps:$4 sm:$0xff]   ;;  %v1844_v7 = vld [vmem:[#allocation8] ss:$16 sps:$4 sm:$0xff]   ;;  %v1837_v8 = vld [vmem:[#allocation2 + $0x18] sm:$0xff]   ;;  %v116_v47 = vand.u32 127, %v115_v46 }
  0x5f   :  { %1791 = vmatprep.mubr.msk.bf16.mxu0 %vm2273_vm0, %v2272_v1  ;;  %1776 = vmatpush3.bf16.msra.mxu0 %v1834_v3  ;;  %v1848_v9 = vld [vmem:[#allocation8 + $0x24] ss:$16 sps:$4 sm:$0xff]   ;;  %v1850_v10 = vld [vmem:[#allocation8 + $0x20] ss:$16 sps:$4 sm:$0xff]   ;;  %v1839_v15 = vld [vmem:[#allocation2 + $0x28] sm:$0xff]  }
  0x60   :  { %1777 = vmatprep.subr.bf16.mxu0 %v2272_v1  ;;  %456 = vmatprep.subr.bf16.mxu1 %v1842_v6  ;;  %v1854_v11 = vld [vmem:[#allocation8 + $0x44] ss:$16 sps:$4 sm:$0xff]   ;;  %v1856_v13 = vld [vmem:[#allocation8 + $0x40] ss:$16 sps:$4 sm:$0xff]   ;;  %v1841_v21 = vld [vmem:[#allocation2 + $0x38] sm:$0xff]  }
  0x61   :  { %457 = vmatpush1.bf16.msra.mxu1 %v1844_v7  ;;  %v1838_v12 = vld [vmem:[#allocation2 + $0x20] sm:$0xff]   ;;  %v1840_v18 = vld [vmem:[#allocation2 + $0x30] sm:$0xff]   ;;  %v1847_v22 = vld [vmem:[#allocation8 + $0xc] ss:$16 sps:$4 sm:$0xff]  }
  0x62   :  { %458 = vmatprep.subr.bf16.mxu1 %v1848_v9  ;;  %v1860_v14 = vld [vmem:[#allocation8 + $0x64] ss:$16 sps:$4 sm:$0xff]   ;;  %v1862_v16 = vld [vmem:[#allocation8 + $0x60] ss:$16 sps:$4 sm:$0xff]   ;;  %v1845_v49 = vld [vmem:[#allocation8 + $0x8] ss:$16 sps:$4 sm:$0xff]  }
  0x63   :  { %1778 = vmatpush3.bf16.msra.mxu0 %v1835_v4  ;;  %v1866_v17 = vld [vmem:[#allocation8 + $0x84] ss:$16 sps:$4 sm:$0xff]   ;;  %v1868_v19 = vld [vmem:[#allocation8 + $0x80] ss:$16 sps:$4 sm:$0xff]   ;;  %v1853_v50 = vld [vmem:[#allocation8 + $0x2c] ss:$16 sps:$4 sm:$0xff]  }
  0x64   :  { %1779 = vmatprep.subr.bf16.mxu0 %v2272_v1  ;;  %v1872_v20 = vld [vmem:[#allocation8 + $0xa4] ss:$16 sps:$4 sm:$0xff]   ;;  %v1874_v23 = vld [vmem:[#allocation8 + $0xa0] ss:$16 sps:$4 sm:$0xff]   ;;  %v1851_v52 = vld [vmem:[#allocation8 + $0x28] ss:$16 sps:$4 sm:$0xff]  }
  0x65   :  { %459 = vmatpush1.bf16.msra.mxu1 %v1850_v10  ;;  %v1878_v24 = vld [vmem:[#allocation8 + $0xc4] ss:$16 sps:$4 sm:$0xff]   ;;  %v1880_v25 = vld [vmem:[#allocation8 + $0xc0] ss:$16 sps:$4 sm:$0xff]   ;;  %v1859_v53 = vld [vmem:[#allocation8 + $0x4c] ss:$16 sps:$4 sm:$0xff]  }
  0x66   :  { %460 = vmatprep.subr.bf16.mxu1 %v1854_v11  ;;  %v1884_v26 = vld [vmem:[#allocation8 + $0xe4] ss:$16 sps:$4 sm:$0xff]   ;;  %v1886_v27 = vld [vmem:[#allocation8 + $0xe0] ss:$16 sps:$4 sm:$0xff]   ;;  %v1857_v54 = vld [vmem:[#allocation8 + $0x48] ss:$16 sps:$4 sm:$0xff]  }
  0x67   :  { %1780 = vmatpush3.bf16.msra.mxu0 %v1836_v5  ;;  %v106_v28 = vld [vmem:[%s2544_s2] sm:$0xff]  ;;  %v1865_v55 = vld [vmem:[#allocation8 + $0x6c] ss:$16 sps:$4 sm:$0xff]   ;;  %v1863_v56 = vld [vmem:[#allocation8 + $0x68] ss:$16 sps:$4 sm:$0xff]  }
  0x68   :  { %1781 = vmatprep.subr.bf16.mxu0 %v2272_v1  ;;  %v1892_v29 = vld [vmem:[#allocation7 + $0x4] ss:$16 sps:$4 sm:$0xff]   ;;  %v2431_v30 = vpack.c.bf16 %v106_v28, %v106_v28  ;;  %v1890_v31 = vld [vmem:[#allocation7] ss:$16 sps:$4 sm:$0xff]   ;;  %v1871_v57 = vld [vmem:[#allocation8 + $0x8c] ss:$16 sps:$4 sm:$0xff]  }
  0x69   :  { %461 = vmatpush1.bf16.msra.mxu1 %v1856_v13  ;;  %v1898_v32 = vld [vmem:[#allocation7 + $0x24] ss:$16 sps:$4 sm:$0xff]   ;;  %v1896_v33 = vld [vmem:[#allocation7 + $0x20] ss:$16 sps:$4 sm:$0xff]   ;;  %v1869_v58 = vld [vmem:[#allocation8 + $0x88] ss:$16 sps:$4 sm:$0xff]  }
  0x6a   :  { %462 = vmatprep.subr.bf16.mxu1 %v1860_v14  ;;  %v1904_v34 = vld [vmem:[#allocation7 + $0x44] ss:$16 sps:$4 sm:$0xff]   ;;  %v1902_v35 = vld [vmem:[#allocation7 + $0x40] ss:$16 sps:$4 sm:$0xff]   ;;  %v1877_v59 = vld [vmem:[#allocation8 + $0xac] ss:$16 sps:$4 sm:$0xff]  }
  0x6b   :  { %1782 = vmatpush3.bf16.msra.mxu0 %v1837_v8  ;;  %v1910_v36 = vld [vmem:[#allocation7 + $0x64] ss:$16 sps:$4 sm:$0xff]   ;;  %v1908_v37 = vld [vmem:[#allocation7 + $0x60] ss:$16 sps:$4 sm:$0xff]   ;;  %v1875_v60 = vld [vmem:[#allocation8 + $0xa8] ss:$16 sps:$4 sm:$0xff]  }
  0x6c   :  { %1783 = vmatprep.subr.bf16.mxu0 %v2272_v1  ;;  %v1916_v38 = vld [vmem:[#allocation7 + $0x84] ss:$16 sps:$4 sm:$0xff]   ;;  %v1914_v39 = vld [vmem:[#allocation7 + $0x80] ss:$16 sps:$4 sm:$0xff]   ;;  %v1883_v61 = vld [vmem:[#allocation8 + $0xcc] ss:$16 sps:$4 sm:$0xff]  }
  0x6d   :  { %463 = vmatpush1.bf16.msra.mxu1 %v1862_v16  ;;  %v1922_v40 = vld [vmem:[#allocation7 + $0xa4] ss:$16 sps:$4 sm:$0xff]   ;;  %v1920_v41 = vld [vmem:[#allocation7 + $0xa0] ss:$16 sps:$4 sm:$0xff]   ;;  %v1881_v62 = vld [vmem:[#allocation8 + $0xc8] ss:$16 sps:$4 sm:$0xff]  }
  0x6e   :  { %464 = vmatprep.subr.bf16.mxu1 %v1866_v17  ;;  %v1928_v42 = vld [vmem:[#allocation7 + $0xc4] ss:$16 sps:$4 sm:$0xff]   ;;  %v1926_v43 = vld [vmem:[#allocation7 + $0xc0] ss:$16 sps:$4 sm:$0xff]   ;;  %v1889_v63 = vld [vmem:[#allocation8 + $0xec] ss:$16 sps:$4 sm:$0xff]  }
  0x6f   :  { %1784 = vmatpush3.bf16.msra.mxu0 %v1838_v12  ;;  %v1934_v44 = vld [vmem:[#allocation7 + $0xe4] ss:$16 sps:$4 sm:$0xff]   ;;  %v1932_v45 = vld [vmem:[#allocation7 + $0xe0] ss:$16 sps:$4 sm:$0xff]   ;;  %v1887_v2 = vld [vmem:[#allocation8 + $0xe8] ss:$16 sps:$4 sm:$0xff]  }
  0x70   :  { %1785 = vmatprep.subr.bf16.mxu0 %v2272_v1  ;;  %v1895_v3 = vld [vmem:[#allocation7 + $0xc] ss:$16 sps:$4 sm:$0xff]   ;;  %v1893_v4 = vld [vmem:[#allocation7 + $0x8] ss:$16 sps:$4 sm:$0xff]  }
  0x71   :  { %465 = vmatpush1.bf16.msra.mxu1 %v1868_v19  ;;  %v1901_v5 = vld [vmem:[#allocation7 + $0x2c] ss:$16 sps:$4 sm:$0xff]   ;;  %v1899_v6 = vld [vmem:[#allocation7 + $0x28] ss:$16 sps:$4 sm:$0xff]   ;;  %v1940_v19 = vld [vmem:[#allocation8 + $0x104] ss:$16 sps:$4 sm:$0xff]  }
  0x72   :  { %466 = vmatprep.subr.bf16.mxu1 %v1872_v20  ;;  %v1907_v7 = vld [vmem:[#allocation7 + $0x4c] ss:$16 sps:$4 sm:$0xff]   ;;  %v1905_v8 = vld [vmem:[#allocation7 + $0x48] ss:$16 sps:$4 sm:$0xff]  }
  0x73   :  { %1786 = vmatpush3.bf16.msra.mxu0 %v1839_v15  ;;  %v1913_v9 = vld [vmem:[#allocation7 + $0x6c] ss:$16 sps:$4 sm:$0xff]   ;;  %v1911_v10 = vld [vmem:[#allocation7 + $0x68] ss:$16 sps:$4 sm:$0xff]  }
  0x74   :  { %1787 = vmatprep.subr.bf16.mxu0 %v2272_v1  ;;  %v1919_v11 = vld [vmem:[#allocation7 + $0x8c] ss:$16 sps:$4 sm:$0xff]   ;;  %v1917_v12 = vld [vmem:[#allocation7 + $0x88] ss:$16 sps:$4 sm:$0xff]  }
  0x75   :  { %467 = vmatpush1.bf16.msra.mxu1 %v1874_v23  ;;  %v1925_v13 = vld [vmem:[#allocation7 + $0xac] ss:$16 sps:$4 sm:$0xff]   ;;  %v1923_v14 = vld [vmem:[#allocation7 + $0xa8] ss:$16 sps:$4 sm:$0xff]  }
  0x76   :  { %468 = vmatprep.subr.bf16.mxu1 %v1878_v24  ;;  %v1931_v15 = vld [vmem:[#allocation7 + $0xcc] ss:$16 sps:$4 sm:$0xff]   ;;  %v1929_v16 = vld [vmem:[#allocation7 + $0xc8] ss:$16 sps:$4 sm:$0xff]  }
  0x77   :  { %1788 = vmatpush3.bf16.msra.mxu0 %v1840_v18  ;;  %v1937_v17 = vld [vmem:[#allocation7 + $0xec] ss:$16 sps:$4 sm:$0xff]   ;;  %v1935_v18 = vld [vmem:[#allocation7 + $0xe8] ss:$16 sps:$4 sm:$0xff]  }
  0x78   :  { %1789 = vmatprep.subr.bf16.mxu0 %v2272_v1  ;;  %v1943_v20 = vld [vmem:[#allocation8 + $0x10c] ss:$16 sps:$4 sm:$0xff]  }
  0x79   :  { %469 = vmatpush1.bf16.msra.mxu1 %v1880_v25 }
  0x7a   :  { %470 = vmatprep.subr.bf16.mxu1 %v1884_v26  ;;  %v1938_v26 = vld [vmem:[#allocation8 + $0x100] ss:$16 sps:$4 sm:$0xff]  }
  0x7b   :  { %1790 = vmatpush3.bf16.msra.mxu0 %v1841_v21 }
  0x7c   :  { %497 = vmatprep.subr.bf16.mxu0 %v1847_v22 }
  0x7d   :  { %471 = vmatpush1.bf16.msra.mxu1 %v1886_v27  ;;  %v1941_v27 = vld [vmem:[#allocation8 + $0x108] ss:$16 sps:$4 sm:$0xff]  }
  0x7e   :  { %698 = vmatprep.subr.bf16.mxu1 %v1892_v29 }
  0x80   :  { %489 = vmatmul.mubr.bf16.vlgmr.msra.gmra.mrb[0].mxu1 %v2431_v30 }
  0x81   :  { %699 = vmatpush1.bf16.msra.mxu1 %v1890_v31  ;;  %730 = vmatprep.mubr.bf16.mxu1 %v2271_v0  ;;  %v1949_v31 = vld [vmem:[#allocation8 + $0x12c] ss:$16 sps:$4 sm:$0xff]  }
  0x82   :  { %700 = vmatprep.subr.bf16.mxu1 %v1898_v32 }
  0x85   :  { %701 = vmatpush1.bf16.msra.mxu1 %v1896_v33 }
  0x86   :  { %702 = vmatprep.subr.bf16.mxu1 %v1904_v34  ;;  %v1944_v34 = vld [vmem:[#allocation8 + $0x120] ss:$16 sps:$4 sm:$0xff]  }
  0x89   :  { %703 = vmatpush1.bf16.msra.mxu1 %v1902_v35  ;;  %v1947_v35 = vld [vmem:[#allocation8 + $0x128] ss:$16 sps:$4 sm:$0xff]  }
  0x8a   :  { %704 = vmatprep.subr.bf16.mxu1 %v1910_v36  ;;  %v1952_v36 = vld [vmem:[#allocation8 + $0x144] ss:$16 sps:$4 sm:$0xff]  }
  0x8d   :  { %705 = vmatpush1.bf16.msra.mxu1 %v1908_v37  ;;  %v1955_v37 = vld [vmem:[#allocation8 + $0x14c] ss:$16 sps:$4 sm:$0xff]  }
  0x8e   :  { %706 = vmatprep.subr.bf16.mxu1 %v1916_v38  ;;  %v1950_v38 = vld [vmem:[#allocation8 + $0x140] ss:$16 sps:$4 sm:$0xff]  }
  0x91   :  { %707 = vmatpush1.bf16.msra.mxu1 %v1914_v39  ;;  %v1953_v39 = vld [vmem:[#allocation8 + $0x148] ss:$16 sps:$4 sm:$0xff]  }
  0x92   :  { %708 = vmatprep.subr.bf16.mxu1 %v1922_v40  ;;  %v1958_v40 = vld [vmem:[#allocation8 + $0x164] ss:$16 sps:$4 sm:$0xff]  }
  0x95   :  { %709 = vmatpush1.bf16.msra.mxu1 %v1920_v41  ;;  %v1961_v41 = vld [vmem:[#allocation8 + $0x16c] ss:$16 sps:$4 sm:$0xff]  }
  0x96   :  { %710 = vmatprep.subr.bf16.mxu1 %v1928_v42  ;;  %v1956_v42 = vld [vmem:[#allocation8 + $0x160] ss:$16 sps:$4 sm:$0xff]  }
  0x99   :  { %711 = vmatpush1.bf16.msra.mxu1 %v1926_v43  ;;  %v1959_v43 = vld [vmem:[#allocation8 + $0x168] ss:$16 sps:$4 sm:$0xff]  }
  0x9a   :  { %712 = vmatprep.subr.bf16.mxu1 %v1934_v44 }
  0x9d   :  { %713 = vmatpush1.bf16.msra.mxu1 %v1932_v45 }
  0x9e   :  { %1064 = vmatprep.subr.bf16.mxu1 %v1940_v19  ;;  %v2004_v19 = vld [vmem:[#allocation7 + $0x160] ss:$16 sps:$4 sm:$0xff]  }
  0xdd   :  { %v119_v48 = vpop.permute.xlu0 %118 }
  0xde   :  { %vm120_vm1 = vcmp.eq.s32.totalorder %v119_v48, %v116_v47 }
  0xdf   :  { %vm1611_vm2 = vmpackc.low %vm120_vm1, %vm120_vm1 }
  0xe0   :  { %1792 = vmatmul.mubr.msk.bf16.vlgmr.msra.gmra.mrb[0].mxu0 %vm1611_vm2, %v2274_v51  ;;  %v1967_v51 = vld [vmem:[#allocation8 + $0x18c] ss:$16 sps:$4 sm:$0xff]  }
  0xe1   :  { %498 = vmatpush1.bf16.msra.mxu0 %v1845_v49  ;;  %529 = vmatprep.mubr.bf16.mxu0 %v2271_v0  ;;  %v1964_v49 = vld [vmem:[#allocation8 + $0x184] ss:$16 sps:$4 sm:$0xff]  }
  0xe2   :  { %499 = vmatprep.subr.bf16.mxu0 %v1853_v50  ;;  %v1962_v50 = vld [vmem:[#allocation8 + $0x180] ss:$16 sps:$4 sm:$0xff]  }
  0xe5   :  { %500 = vmatpush1.bf16.msra.mxu0 %v1851_v52  ;;  %v1965_v52 = vld [vmem:[#allocation8 + $0x188] ss:$16 sps:$4 sm:$0xff]  }
  0xe6   :  { %501 = vmatprep.subr.bf16.mxu0 %v1859_v53  ;;  %v1970_v53 = vld [vmem:[#allocation8 + $0x1a4] ss:$16 sps:$4 sm:$0xff]  }
  0xe9   :  { %502 = vmatpush1.bf16.msra.mxu0 %v1857_v54  ;;  %v1968_v54 = vld [vmem:[#allocation8 + $0x1a0] ss:$16 sps:$4 sm:$0xff]  }
  0xea   :  { %503 = vmatprep.subr.bf16.mxu0 %v1865_v55  ;;  %v1973_v55 = vld [vmem:[#allocation8 + $0x1ac] ss:$16 sps:$4 sm:$0xff]  }
  0xed   :  { %504 = vmatpush1.bf16.msra.mxu0 %v1863_v56  ;;  %v1971_v56 = vld [vmem:[#allocation8 + $0x1a8] ss:$16 sps:$4 sm:$0xff]  }
  0xee   :  { %505 = vmatprep.subr.bf16.mxu0 %v1871_v57  ;;  %v1976_v57 = vld [vmem:[#allocation8 + $0x1c4] ss:$16 sps:$4 sm:$0xff]  }
  0xf1   :  { %506 = vmatpush1.bf16.msra.mxu0 %v1869_v58  ;;  %v1974_v58 = vld [vmem:[#allocation8 + $0x1c0] ss:$16 sps:$4 sm:$0xff]  }
  0xf2   :  { %507 = vmatprep.subr.bf16.mxu0 %v1877_v59  ;;  %v1979_v59 = vld [vmem:[#allocation8 + $0x1cc] ss:$16 sps:$4 sm:$0xff]  }
  0xf5   :  { %508 = vmatpush1.bf16.msra.mxu0 %v1875_v60  ;;  %v1977_v60 = vld [vmem:[#allocation8 + $0x1c8] ss:$16 sps:$4 sm:$0xff]  }
  0xf6   :  { %509 = vmatprep.subr.bf16.mxu0 %v1883_v61  ;;  %v1982_v61 = vld [vmem:[#allocation8 + $0x1e4] ss:$16 sps:$4 sm:$0xff]  }
  0xf9   :  { %510 = vmatpush1.bf16.msra.mxu0 %v1881_v62  ;;  %v1980_v62 = vld [vmem:[#allocation8 + $0x1e0] ss:$16 sps:$4 sm:$0xff]  }
  0xfa   :  { %511 = vmatprep.subr.bf16.mxu0 %v1889_v63  ;;  %v1985_v63 = vld [vmem:[#allocation8 + $0x1ec] ss:$16 sps:$4 sm:$0xff]  }
  0xfd   :  { %512 = vmatpush1.bf16.msra.mxu0 %v1887_v2  ;;  %v1983_v2 = vld [vmem:[#allocation8 + $0x1e8] ss:$16 sps:$4 sm:$0xff]  }
  0xfe   :  { %739 = vmatprep.subr.bf16.mxu0 %v1895_v3  ;;  %v107_v3 = vld [vmem:[%s2544_s2 + $0x8] sm:$0xff] }
 0x100   :  { %530 = vmatmul.mubr.bf16.vlgmr.msra.gmra.mrb[4].mxu0 %v2431_v30  ;;  %v1946_v30 = vld [vmem:[#allocation8 + $0x124] ss:$16 sps:$4 sm:$0xff]  }
 0x101   :  { %740 = vmatpush1.bf16.msra.mxu0 %v1893_v4  ;;  %771 = vmatprep.mubr.bf16.mxu0 %v2271_v0  ;;  %v870_v4 = vpack.c.bf16 %v107_v3, %v107_v3 }
 0x102   :  { %741 = vmatprep.subr.bf16.mxu0 %v1901_v5  ;;  %v1988_v5 = vld [vmem:[#allocation7 + $0x104] ss:$16 sps:$4 sm:$0xff]  }
 0x105   :  { %742 = vmatpush1.bf16.msra.mxu0 %v1899_v6  ;;  %v1991_v6 = vld [vmem:[#allocation7 + $0x10c] ss:$16 sps:$4 sm:$0xff]  }
 0x106   :  { %743 = vmatprep.subr.bf16.mxu0 %v1907_v7  ;;  %v1986_v7 = vld [vmem:[#allocation7 + $0x100] ss:$16 sps:$4 sm:$0xff]  }
 0x109   :  { %744 = vmatpush1.bf16.msra.mxu0 %v1905_v8  ;;  %v1989_v8 = vld [vmem:[#allocation7 + $0x108] ss:$16 sps:$4 sm:$0xff]  }
 0x10a   :  { %745 = vmatprep.subr.bf16.mxu0 %v1913_v9  ;;  %v1994_v9 = vld [vmem:[#allocation7 + $0x124] ss:$16 sps:$4 sm:$0xff]  }
 0x10d   :  { %746 = vmatpush1.bf16.msra.mxu0 %v1911_v10  ;;  %v1997_v10 = vld [vmem:[#allocation7 + $0x12c] ss:$16 sps:$4 sm:$0xff]  }
 0x10e   :  { %747 = vmatprep.subr.bf16.mxu0 %v1919_v11  ;;  %v1992_v11 = vld [vmem:[#allocation7 + $0x120] ss:$16 sps:$4 sm:$0xff]  }
 0x111   :  { %748 = vmatpush1.bf16.msra.mxu0 %v1917_v12  ;;  %v1995_v12 = vld [vmem:[#allocation7 + $0x128] ss:$16 sps:$4 sm:$0xff]  }
 0x112   :  { %749 = vmatprep.subr.bf16.mxu0 %v1925_v13  ;;  %v2000_v13 = vld [vmem:[#allocation7 + $0x144] ss:$16 sps:$4 sm:$0xff]  }
 0x115   :  { %750 = vmatpush1.bf16.msra.mxu0 %v1923_v14  ;;  %v2003_v14 = vld [vmem:[#allocation7 + $0x14c] ss:$16 sps:$4 sm:$0xff]  }
 0x116   :  { %751 = vmatprep.subr.bf16.mxu0 %v1931_v15  ;;  %v1998_v15 = vld [vmem:[#allocation7 + $0x140] ss:$16 sps:$4 sm:$0xff]  }
 0x119   :  { %752 = vmatpush1.bf16.msra.mxu0 %v1929_v16  ;;  %v2001_v16 = vld [vmem:[#allocation7 + $0x148] ss:$16 sps:$4 sm:$0xff]  }
 0x11a   :  { %753 = vmatprep.subr.bf16.mxu0 %v1937_v17  ;;  %v2006_v17 = vld [vmem:[#allocation7 + $0x164] ss:$16 sps:$4 sm:$0xff]  }
 0x11d   :  { %754 = vmatpush1.bf16.msra.mxu0 %v1935_v18  ;;  %v2009_v18 = vld [vmem:[#allocation7 + $0x16c] ss:$16 sps:$4 sm:$0xff]  }
 0x11e   :  { %1105 = vmatprep.subr.bf16.mxu0 %v1943_v20  ;;  %v2007_v20 = vld [vmem:[#allocation7 + $0x168] ss:$16 sps:$4 sm:$0xff]  }
 0x153   :  { %v2439_v21 = vpop.f32.mrb[0].mxu1 }
 0x154   :  { %v2441_v22 = vpop.f32.mrb[1].mxu1 }
 0x155   :  { %v494_v23 = vpop.f32.mrb[2].mxu1 }
 0x156   :  { %v495_v24 = vpop.f32.mrb[3].mxu1  ;;  %v2015_v23 = vld [vmem:[#allocation7 + $0x18c] ss:$16 sps:$4 sm:$0xff]  }
 0x157   :  { %v2010_v24 = vld [vmem:[#allocation7 + $0x180] ss:$16 sps:$4 sm:$0xff]  }
 0x1b3   :  { %v222_v25 = vpop.f32.mrb[0].mxu0 }
 0x1b4   :  { %v230_v28 = vpack.c.bf16 %v222_v25, %v222_v25  ;;  %v1793_v29 = vpop.f32.mrb[1].mxu0  ;;  %v2013_v25 = vld [vmem:[#allocation7 + $0x188] ss:$16 sps:$4 sm:$0xff]  }
 0x1b5   :  { %v225_v32 = vpop.f32.mrb[2].mxu0  ;;  %v2019_v29 = vld [vmem:[#allocation7 + $0x1a8] ss:$16 sps:$4 sm:$0xff]  }
 0x1b6   :  { %v1794_v33 = vpop.f32.mrb[3].mxu0  ;;  %731 = vmatmul.mubr.bf16.vlgmr.msra.gmra.mrb[4].mxu1 %v230_v28  ;;  %772 = vmatmul.mubr.bf16.vlgmr.msra.gmra.mrb[8].mxu0 %v230_v28  ;;  %v2021_v28 = vld [vmem:[#allocation7 + $0x1ac] ss:$16 sps:$4 sm:$0xff]   ;;  %v2022_v32 = vld [vmem:[#allocation7 + $0x1c0] ss:$16 sps:$4 sm:$0xff]  }
 0x1b7   :  { %1065 = vmatpush1.bf16.msra.mxu1 %v1938_v26  ;;  %1106 = vmatpush1.bf16.msra.mxu0 %v1941_v27  ;;  %v2018_v26 = vld [vmem:[#allocation7 + $0x1a4] ss:$16 sps:$4 sm:$0xff]   ;;  %v2016_v27 = vld [vmem:[#allocation7 + $0x1a0] ss:$16 sps:$4 sm:$0xff]   ;;  %v2025_v33 = vld [vmem:[#allocation7 + $0x1c8] ss:$16 sps:$4 sm:$0xff]  }
 0x1b8   :  { %1066 = vmatprep.subr.bf16.mxu1 %v1946_v30  ;;  %1107 = vmatprep.subr.bf16.mxu0 %v1949_v31  ;;  %v2024_v30 = vld [vmem:[#allocation7 + $0x1c4] ss:$16 sps:$4 sm:$0xff]   ;;  %v2027_v31 = vld [vmem:[#allocation7 + $0x1cc] ss:$16 sps:$4 sm:$0xff]  }
 0x1b9   :  { %1096 = vmatprep.mubr.bf16.mxu1 %v2271_v0  ;;  %1137 = vmatprep.mubr.bf16.mxu0 %v2271_v0 }
 0x1bb   :  { %1067 = vmatpush1.bf16.msra.mxu1 %v1944_v34  ;;  %1108 = vmatpush1.bf16.msra.mxu0 %v1947_v35  ;;  %v2030_v34 = vld [vmem:[#allocation7 + $0x1e4] ss:$16 sps:$4 sm:$0xff]   ;;  %v2033_v35 = vld [vmem:[#allocation7 + $0x1ec] ss:$16 sps:$4 sm:$0xff]  }
 0x1bc   :  { %1068 = vmatprep.subr.bf16.mxu1 %v1952_v36  ;;  %1109 = vmatprep.subr.bf16.mxu0 %v1955_v37  ;;  %v2028_v36 = vld [vmem:[#allocation7 + $0x1e0] ss:$16 sps:$4 sm:$0xff]   ;;  %v2031_v37 = vld [vmem:[#allocation7 + $0x1e8] ss:$16 sps:$4 sm:$0xff]  }
 0x1bf   :  { %1069 = vmatpush1.bf16.msra.mxu1 %v1950_v38  ;;  %1110 = vmatpush1.bf16.msra.mxu0 %v1953_v39  ;;  %v2456_v38 = vshrl.u32 %v115_v46, 7 }
 0x1c0   :  { %1070 = vmatprep.subr.bf16.mxu1 %v1958_v40  ;;  %1111 = vmatprep.subr.bf16.mxu0 %v1961_v41  ;;  %v780_v40 = vld [vmem:[%s2548_s6] sm:$0xf] }
 0x1c1   :  { %v784_v39 = vsub.s32 0, %v2456_v38  ;;  %v788_v41 = vsub.s32 1, %v2456_v38 }
 0x1c3   :  { %1071 = vmatpush1.bf16.msra.mxu1 %v1956_v42  ;;  %1112 = vmatpush1.bf16.msra.mxu0 %v1959_v43  ;;  %v785_v42 = vrot.slane %v780_v40, %v784_v39 }
 0x1c4   :  { %1072 = vmatprep.subr.bf16.mxu1 %v1964_v49  ;;  %1113 = vmatprep.subr.bf16.mxu0 %v1967_v51 }
 0x1c7   :  { %1073 = vmatpush1.bf16.msra.mxu1 %v1962_v50  ;;  %1114 = vmatpush1.bf16.msra.mxu0 %v1965_v52 }
 0x1c8   :  { %1074 = vmatprep.subr.bf16.mxu1 %v1970_v53  ;;  %1115 = vmatprep.subr.bf16.mxu0 %v1973_v55 }
 0x1cb   :  { %1075 = vmatpush1.bf16.msra.mxu1 %v1968_v54  ;;  %1116 = vmatpush1.bf16.msra.mxu0 %v1971_v56  ;;  %v796_v54 = vsub.s32 3, %v2456_v38 }
 0x1cc   :  { %1076 = vmatprep.subr.bf16.mxu1 %v1976_v57  ;;  %1117 = vmatprep.subr.bf16.mxu0 %v1979_v59 }
 0x1cf   :  { %1077 = vmatpush1.bf16.msra.mxu1 %v1974_v58  ;;  %1118 = vmatpush1.bf16.msra.mxu0 %v1977_v60 }
 0x1d0   :  { %1078 = vmatprep.subr.bf16.mxu1 %v1982_v61  ;;  %1119 = vmatprep.subr.bf16.mxu0 %v1985_v63 }
 0x1d3   :  { %v2445_v44 = vpop.f32.mrb[4].mxu0  ;;  %1079 = vmatpush1.bf16.msra.mxu1 %v1980_v62  ;;  %1120 = vmatpush1.bf16.msra.mxu0 %v1983_v2 }
 0x1d4   :  { %v2447_v45 = vpop.f32.mrb[5].mxu0  ;;  %1306 = vmatprep.subr.bf16.mxu1 %v1988_v5  ;;  %1347 = vmatprep.subr.bf16.mxu0 %v1991_v6 }
 0x1d5   :  { %v535_v47 = vpop.f32.mrb[6].mxu0 }
 0x1d6   :  { %v536_v48 = vpop.f32.mrb[7].mxu0  ;;  %1097 = vmatmul.mubr.bf16.vlgmr.msra.gmra.mrb[8].mxu1 %v870_v4  ;;  %1138 = vmatmul.mubr.bf16.vlgmr.msra.gmra.mrb[12].mxu0 %v870_v4 }
 0x1d7   :  { %1338 = vmatprep.mubr.bf16.mxu1 %v2271_v0  ;;  %1307 = vmatpush1.bf16.msra.mxu1 %v1986_v7  ;;  %v789_v48 = vrot.slane %v780_v40, %v788_v41 }
 0x1d8   :  { %1348 = vmatpush1.bf16.msra.mxu0 %v1989_v8  ;;  %1379 = vmatprep.mubr.bf16.mxu0 %v2271_v0  ;;  %v2012_v0 = vld [vmem:[#allocation7 + $0x184] ss:$16 sps:$4 sm:$0xff]  }
 0x1d9   :  { %1308 = vmatprep.subr.bf16.mxu1 %v1994_v9  ;;  %1349 = vmatprep.subr.bf16.mxu0 %v1997_v10  ;;  %v110_v9 = vld [vmem:[#allocation5] sm:$0xff] }
 0x1db   :  { %1309 = vmatpush1.bf16.msra.mxu1 %v1992_v11 }
 0x1dc   :  { %1350 = vmatpush1.bf16.msra.mxu0 %v1995_v12  ;;  %1310 = vmatprep.subr.bf16.mxu1 %v2000_v13 }
 0x1dd   :  { %1351 = vmatprep.subr.bf16.mxu0 %v2003_v14 }
 0x1df   :  { %1311 = vmatpush1.bf16.msra.mxu1 %v1998_v15 }
 0x1e0   :  { %1352 = vmatpush1.bf16.msra.mxu0 %v2001_v16  ;;  %1312 = vmatprep.subr.bf16.mxu1 %v2006_v17 }
 0x1e1   :  { %1353 = vmatprep.subr.bf16.mxu0 %v2009_v18 }
 0x1e3   :  { %1313 = vmatpush1.bf16.msra.mxu1 %v2004_v19 }
 0x1e4   :  { %1354 = vmatpush1.bf16.msra.mxu0 %v2007_v20  ;;  %1314 = vmatprep.subr.bf16.mxu1 %v2012_v0 }
 0x1e5   :  { %1355 = vmatprep.subr.bf16.mxu0 %v2015_v23 }
 0x1e7   :  { %1315 = vmatpush1.bf16.msra.mxu1 %v2010_v24 }
 0x1e8   :  { %1356 = vmatpush1.bf16.msra.mxu0 %v2013_v25  ;;  %1316 = vmatprep.subr.bf16.mxu1 %v2018_v26 }
 0x1e9   :  { %1357 = vmatprep.subr.bf16.mxu0 %v2021_v28 }
 0x1eb   :  { %1317 = vmatpush1.bf16.msra.mxu1 %v2016_v27 }
 0x1ec   :  { %1358 = vmatpush1.bf16.msra.mxu0 %v2019_v29  ;;  %1318 = vmatprep.subr.bf16.mxu1 %v2024_v30  ;;  %v2034_v29 = vld [vmem:[#allocation10] sm:$0xff]   ;;  %v2035_v30 = vld [vmem:[#allocation10 + $0x8] sm:$0xff]  }
 0x1ed   :  { %1359 = vmatprep.subr.bf16.mxu0 %v2027_v31  ;;  %v2036_v31 = vld [vmem:[#allocation10 + $0x10] sm:$0xff]  }
 0x1ef   :  { %1319 = vmatpush1.bf16.msra.mxu1 %v2022_v32  ;;  %v2037_v32 = vld [vmem:[#allocation10 + $0x18] sm:$0xff]  }
 0x1f0   :  { %1360 = vmatpush1.bf16.msra.mxu0 %v2025_v33  ;;  %1320 = vmatprep.subr.bf16.mxu1 %v2030_v34  ;;  %v2038_v33 = vld [vmem:[#allocation10 + $0x20] sm:$0xff]   ;;  %v2039_v34 = vld [vmem:[#allocation10 + $0x28] sm:$0xff]  }
 0x1f1   :  { %1361 = vmatprep.subr.bf16.mxu0 %v2033_v35  ;;  %v2040_v35 = vld [vmem:[#allocation10 + $0x30] sm:$0xff]  }
 0x1f3   :  { %1321 = vmatpush1.bf16.msra.mxu1 %v2028_v36  ;;  %v2041_v36 = vld [vmem:[#allocation10 + $0x38] sm:$0xff]  }
 0x1f4   :  { %1362 = vmatpush1.bf16.msra.mxu0 %v2031_v37  ;;  %1795 = vmatprep.subr.bf16.mxu1 %v2272_v1  ;;  %v1744_v37 = vld [vmem:[%s2548_s6 + $0x4] sm:$0xf]  ;;  %s2275_s6 = smov [#allocation12]  }
 0x1f5   :  { %s1569_s19 = sshll.u32 %s2275_s6, 4  ;;  %s1570_s19 = int_to_ptr.vmem [resolvable:$true] %s1569_s19 }
 0x1f6   :  { %s2184_s1 = scalar_lea.vmem %s1570_s19, 256  ;;  %p2189_p13 = scmp.lt.s32.totalorder %s1570_s19, %s1570_s19 }
 0x1f7   :  { %p2185_p12 = scmp.ne.s32.totalorder %s1570_s19, %s2184_s1  ;;  %p2190_p0 = scmp.lt.s32.totalorder %s2184_s1, %s2184_s1 }
 0x1f9   :  { %p2191_p1 = por %p2190_p0, %p2189_p13 }
 0x1fb   :  { %p2192_p2 = pnand %p2191_p1, %p2185_p12 }
 0x289   :  { %v732_v43 = vpop.f32.mrb[4].mxu1  ;;  %v773_v47 = vpop.f32.mrb[8].mxu0 }
 0x28a   :  { %v733_v49 = vadd.f32 %v732_v43, %v2439_v21  ;;  %v774_v46 = vadd.f32 %v773_v47, %v2445_v44  ;;  %v734_v50 = vpop.f32.mrb[5].mxu1  ;;  %v775_v51 = vpop.f32.mrb[9].mxu0  ;;  %v797_v21 = vrot.slane %v780_v40, %v796_v54  ;;  %v792_v44 = vsub.s32 2, %v2456_v38 }
 0x28b   :  { %v735_v52 = vadd.f32 %v734_v50, %v2441_v22  ;;  %v776_v53 = vadd.f32 %v775_v51, %v2447_v45  ;;  %v736_v55 = vpop.f32.mrb[6].mxu1  ;;  %v777_v56 = vpop.f32.mrb[10].mxu0  ;;  %v1398_v47 = vrot.slane %v1744_v37, %v788_v41 }
 0x28c   :  { %v802_v57 = vadd.f32 %v785_v42, %v733_v49  ;;  %v737_v58 = vpop.f32.mrb[7].mxu1  ;;  %v778_v59 = vpop.f32.mrb[11].mxu0  ;;  %v793_v45 = vrot.slane %v780_v40, %v792_v44  ;;  %v1394_v40 = vrot.slane %v1744_v37, %v784_v39  ;;  %v1406_v39 = vrot.slane %v1744_v37, %v796_v54 }
 0x28d   :  { %v803_v60 = vadd.f32 %v789_v48, %v735_v52  ;;  %v805_v22 = vadd.f32 %v797_v21, %v776_v53 }
 0x28e   :  { %v1677_v61 = vmul.f32 -1.442695, %v802_v57  ;;  %v804_v2 = vadd.f32 %v793_v45, %v774_v46 }
 0x28f   :  { %v1678_v62 = vmul.f32 -1.442695, %v803_v60  ;;  %v1679_v63 = vmul.f32 -1.442695, %v805_v22 }
 0x290   :  { %2042 = vpow2.f32 %v1677_v61  ;;  %v1402_v61 = vrot.slane %v1744_v37, %v792_v44 }
 0x291   :  { %2044 = vpow2.f32 %v1678_v62 }
 0x292   :  { %2046 = vpow2.f32 %v1679_v63 }
 0x293   :  { %2048 = vtanh.f32 %v804_v2 }
 0x29a   :  { %v2043_v3 = vpop.eup %2042 }
 0x29b   :  { %v2045_v4 = vpop.eup %2044  ;;  %v809_v5 = vadd.f32 1.0, %v2043_v3 }
 0x29c   :  { %v815_v6 = vadd.f32 1.0, %v2045_v4  ;;  %v2047_v7 = vpop.eup %2046 }
 0x29d   :  { %2050 = vrcp.f32 %v809_v5  ;;  %v2049_v8 = vpop.eup %2048  ;;  %v822_v13 = vadd.f32 1.0, %v2047_v7  ;;  %v111_v5 = vld [vmem:[#allocation5 + $0x8] sm:$0xff] }
 0x29e   :  { %2052 = vrcp.f32 %v815_v6 }
 0x29f   :  { %2054 = vrcp.f32 %v822_v13 }
 0x2a7   :  { %v2051_v10 = vpop.eup %2050 }
 0x2a8   :  { %v2053_v11 = vpop.eup %2052  ;;  %v826_v12 = vmul.f32 %v2051_v10, %v2049_v8 }
 0x2a9   :  { %v825_v14 = vmul.f32 %v2053_v11, %v110_v9  ;;  %v2055_v16 = vpop.eup %2054  ;;  %v1098_v20 = vpop.f32.mrb[8].mxu1 }
 0x2aa   :  { %v1100_v0 = vpop.f32.mrb[9].mxu1  ;;  %v1139_v25 = vpop.f32.mrb[12].mxu0 }
 0x2ab   :  { %v827_v15 = vadd.f32 %v826_v12, %v825_v14  ;;  %v1102_v23 = vpop.f32.mrb[10].mxu1  ;;  %v1141_v26 = vpop.f32.mrb[13].mxu0 }
 0x2ac   :  { %v1103_v24 = vpop.f32.mrb[11].mxu1  ;;  %v1143_v27 = vpop.f32.mrb[14].mxu0 }
 0x2ad   :  { %831 = vst [vmem:[#allocation14] sm:$0xff] %v827_v15  ;;  %2056 = vtanh.f32 %v827_v15  ;;  %v1144_v28 = vpop.f32.mrb[15].mxu0 }
 0x2b7   :  { %v2057_v17 = vpop.eup %2056 }
 0x2b8   :  { %v829_v18 = vmul.f32 %v2057_v17, %v2055_v16 }
 0x2ba   :  { %v836_v19 = vpack.c.bf16 %v829_v18, %v829_v18  ;;  %830 = vst [vmem:[#allocation12] sm:$0xff] %v829_v18 }
 0x2bc   :  { %1339 = vmatmul.mubr.bf16.vlgmr.msra.gmra.mrb[12].mxu1 %v836_v19  ;;  %1380 = vmatmul.mubr.bf16.vlgmr.msra.gmra.mrb[16].mxu0 %v836_v19 }
 0x2bd   :  { %1811 = vmatprep.mubr.msk.bf16.mxu1 %vm2273_vm0, %v2272_v1  ;;  %1796 = vmatpush3.bf16.msra.mxu1 %v2034_v29 }
 0x2be   :  { %1797 = vmatprep.subr.bf16.mxu1 %v2272_v1 }
 0x2c1   :  { %1798 = vmatpush3.bf16.msra.mxu1 %v2035_v30 }
 0x2c2   :  { %1799 = vmatprep.subr.bf16.mxu1 %v2272_v1 }
 0x2c5   :  { %1800 = vmatpush3.bf16.msra.mxu1 %v2036_v31 }
 0x2c6   :  { %1801 = vmatprep.subr.bf16.mxu1 %v2272_v1 }
 0x2c9   :  { %1802 = vmatpush3.bf16.msra.mxu1 %v2037_v32 }
 0x2ca   :  { %1803 = vmatprep.subr.bf16.mxu1 %v2272_v1 }
 0x2cd   :  { %1804 = vmatpush3.bf16.msra.mxu1 %v2038_v33 }
 0x2ce   :  { %1805 = vmatprep.subr.bf16.mxu1 %v2272_v1 }
 0x2d1   :  { %1806 = vmatpush3.bf16.msra.mxu1 %v2039_v34 }
 0x2d2   :  { %1807 = vmatprep.subr.bf16.mxu1 %v2272_v1 }
 0x2d5   :  { %1808 = vmatpush3.bf16.msra.mxu1 %v2040_v35 }
 0x2d6   :  { %1809 = vmatprep.subr.bf16.mxu1 %v2272_v1 }
 0x2d9   :  { %1810 = vmatpush3.bf16.msra.mxu1 %v2041_v36 }
 0x38f   :  { %v1340_v42 = vpop.f32.mrb[12].mxu1  ;;  %v1381_v43 = vpop.f32.mrb[16].mxu0 }
 0x390   :  { %v1341_v48 = vadd.f32 %v1340_v42, %v1098_v20  ;;  %v1382_v49 = vadd.f32 %v1381_v43, %v1139_v25  ;;  %v1342_v46 = vpop.f32.mrb[13].mxu1  ;;  %v1383_v50 = vpop.f32.mrb[17].mxu0 }
 0x391   :  { %v1343_v51 = vadd.f32 %v1342_v46, %v1100_v0  ;;  %v1384_v52 = vadd.f32 %v1383_v50, %v1141_v26  ;;  %v1344_v1 = vpop.f32.mrb[14].mxu1  ;;  %v1385_v53 = vpop.f32.mrb[18].mxu0 }
 0x392   :  { %v1411_v55 = vadd.f32 %v1394_v40, %v1341_v48  ;;  %v1345_v56 = vpop.f32.mrb[15].mxu1  ;;  %v1386_v57 = vpop.f32.mrb[19].mxu0  ;;  %v1413_v21 = vadd.f32 %v1402_v61, %v1382_v49 }
 0x393   :  { %v1412_v58 = vadd.f32 %v1398_v47, %v1343_v51  ;;  %v1414_v41 = vadd.f32 %v1406_v39, %v1384_v52 }
 0x394   :  { %v1745_v59 = vmul.f32 -1.442695, %v1411_v55 }
 0x395   :  { %v1746_v60 = vmul.f32 -1.442695, %v1412_v58  ;;  %v1747_v62 = vmul.f32 -1.442695, %v1414_v41 }
 0x396   :  { %2058 = vpow2.f32 %v1745_v59 }
 0x397   :  { %2060 = vpow2.f32 %v1746_v60 }
 0x398   :  { %2062 = vpow2.f32 %v1747_v62 }
 0x399   :  { %2064 = vtanh.f32 %v1413_v21 }
 0x3a0   :  { %v2059_v22 = vpop.eup %2058 }
 0x3a1   :  { %v2061_v45 = vpop.eup %2060  ;;  %v1418_v63 = vadd.f32 1.0, %v2059_v22 }
 0x3a2   :  { %v1424_v2 = vadd.f32 1.0, %v2061_v45  ;;  %v2063_v3 = vpop.eup %2062 }
 0x3a3   :  { %2066 = vrcp.f32 %v1418_v63  ;;  %v2065_v4 = vpop.eup %2064  ;;  %v1431_v8 = vadd.f32 1.0, %v2063_v3 }
 0x3a4   :  { %2068 = vrcp.f32 %v1424_v2 }
 0x3a5   :  { %2070 = vrcp.f32 %v1431_v8 }
 0x3ad   :  { %v2067_v54 = vpop.eup %2066 }
 0x3ae   :  { %v2069_v6 = vpop.eup %2068  ;;  %v1435_v7 = vmul.f32 %v2067_v54, %v2065_v4 }
 0x3af   :  { %v1434_v9 = vmul.f32 %v2069_v6, %v111_v5  ;;  %v2071_v44 = vpop.eup %2070 }
 0x3b1   :  { %v1436_v38 = vadd.f32 %v1435_v7, %v1434_v9 }
 0x3b3   :  { %1440 = vst [vmem:[#allocation14 + $0x8] sm:$0xff] %v1436_v38  ;;  %2072 = vtanh.f32 %v1436_v38 }
 0x3bd   :  { %v2073_v10 = vpop.eup %2072 }
 0x3be   :  { %v1438_v11 = vmul.f32 %v2073_v10, %v2071_v44 }
 0x3c0   :  { %v1441_v12 = vpack.c.bf16 %v1438_v11, %v1438_v11  ;;  %1439 = vst [vmem:[#allocation12 + $0x8] sm:$0xff] %v1438_v11 }
 0x3c2   :  { %1812 = vmatmul.mubr.bf16.vlgmr.msra.gmra.mrb[16].mxu1 %v1441_v12 }
 0x3c3   :  { %2195 = shalt.err (!%p2192_p2)
}
 0x3c4   :  { %s2196_s21 = scalar_lea.hbm %s2552_s10, 256 }
 0x3c5   :  { %p2197_p3 = scmp.ne.s32.totalorder %s2552_s10, %s2196_s21  ;;  %p2200_p4 = scmp.lt.u32.totalorder %s2196_s21, %s2552_s10 }
 0x3c7   :  { %p2202_p5 = pnand %p2200_p4, %p2197_p3 }
 0x3c9   :  { %2205 = shalt.err (!%p2202_p5)
}
 0x3ca   :  { %1575 = dma.vmem_to_hbm [thread:$0]  %s1570_s19, 256, %s2552_s10, [#allocation13], %s2261_s27, %s2261_s27, %s2262_s28  }
 0x3cb   :  { %s2276_s14 = smov [#allocation14]  }
 0x3cc   :  { %s1581_s4 = sshll.u32 %s2276_s14, 4  ;;  %s1582_s4 = int_to_ptr.vmem [resolvable:$true] %s1581_s4 }
 0x3cd   :  { %s2206_s18 = scalar_lea.vmem %s1582_s4, 256  ;;  %p2211_p7 = scmp.lt.s32.totalorder %s1582_s4, %s1582_s4 }
 0x3ce   :  { %p2207_p6 = scmp.ne.s32.totalorder %s1582_s4, %s2206_s18  ;;  %p2212_p8 = scmp.lt.s32.totalorder %s2206_s18, %s2206_s18 }
 0x3d0   :  { %p2213_p9 = por %p2212_p8, %p2211_p7 }
 0x3d2   :  { %p2214_p10 = pnand %p2213_p9, %p2207_p6 }
 0x3d4   :  { %2217 = shalt.err (!%p2214_p10)
}
 0x3d5   :  { %s2218_s0 = scalar_lea.hbm %s2553_s11, 256 }
 0x3d6   :  { %p2219_p11 = scmp.ne.s32.totalorder %s2553_s11, %s2218_s0  ;;  %p2222_p12 = scmp.lt.u32.totalorder %s2218_s0, %s2553_s11 }
 0x3d8   :  { %p2224_p13 = pnand %p2222_p12, %p2219_p11 }
 0x3da   :  { %2227 = shalt.err (!%p2224_p13)
}
 0x3db   :  { %1587 = dma.vmem_to_hbm [thread:$0]  %s1582_s4, 256, %s2553_s11, [#allocation13], %s2261_s27, %s2261_s27, %s2262_s28  }
 0x3dc   :  { %v1748_v13 = vld [vmem:[%s2550_s8] ss:$0 sm:$0xff]  ;;  %s2277_s6 = smov [#allocation11]  }
 0x3dd   :  { %s1560_s19 = sshll.u32 %s2277_s6, 4  ;;  %s1561_s19 = int_to_ptr.vmem [resolvable:$true] %s1560_s19 }
 0x3de   :  { %s2228_s1 = scalar_lea.vmem %s1561_s19, 128  ;;  %p2233_p1 = scmp.lt.s32.totalorder %s1561_s19, %s1561_s19 }
 0x3df   :  { %p2229_p0 = scmp.ne.s32.totalorder %s1561_s19, %s2228_s1  ;;  %p2234_p2 = scmp.lt.s32.totalorder %s2228_s1, %s2228_s1 }
 0x3e1   :  { %p2235_p3 = por %p2234_p2, %p2233_p1 }
 0x3e3   :  { %p2236_p4 = pnand %p2235_p3, %p2229_p0 }
 0x495   :  { %v1547_v14 = vpop.f32.mrb[16].mxu1 }
 0x496   :  { %v1548_v15 = vadd.f32 %v1748_v13, %v1547_v14  ;;  %v1813_v16 = vpop.f32.mrb[17].mxu1 }
 0x497   :  { %v1550_v17 = vpop.f32.mrb[18].mxu1 }
 0x498   :  { %1553 = vst [vmem:[#allocation11] sm:$0xff] %v1548_v15  ;;  %v1814_v18 = vpop.f32.mrb[19].mxu1 }
 0x499   :  { %2239 = shalt.err (!%p2236_p4)
}
 0x49a   :  { %s2240_s8 = scalar_lea.hbm %s2551_s9, 128 }
 0x49b   :  { %p2241_p5 = scmp.ne.s32.totalorder %s2551_s9, %s2240_s8  ;;  %p2244_p6 = scmp.lt.u32.totalorder %s2240_s8, %s2551_s9 }
 0x49d   :  { %p2246_p7 = pnand %p2244_p6, %p2241_p5 }
 0x49f   :  { %2249 = shalt.err (!%p2246_p7)
}
 0x4a0   :  { %1563 = dma.vmem_to_hbm [thread:$0]  %s1561_s19, 128, %s2551_s9, [#allocation4]  }
 0x4a1   :  { %2256 = dma.done.wait [#allocation4], 128  }
 0x4a2   :  { %2257 = vsyncadd [#allocation4], 4294967168 }
 0x4a3   :  { %2258 = dma.done.wait [#allocation13], 512  }
 0x4a4   :  { %2259 = vsyncadd [#allocation13], 4294966784 }
 0x4a5   :  { %1597 = vsyncpa [#allocation3], 1 }
 0x4a6   :  { %1598 = vsyncpa [#allocation6], 1 }
 0x4a7   :  { %1599 = vsyncpa [#allocation9], 1 }
 0x4a8   :  { %1600 = vsyncpa [#allocation4], 1 }
 0x4a9   :  { %1601 = vsyncpa [#allocation13], 1 }

</bundles_post_ra>
